<compile_context>
chip_gen: v7x
topology: tpu7x:2x2x1
jax: 0.10.0
libtpu: 0.0.40
codegen_flags: <defaults>
</compile_context>

<pallas_src>
import jax
import jax.numpy as jnp
from jax import lax
from jax.experimental import pallas as pl
from jax.experimental.pallas import tpu as pltpu

_MIB = 1024 * 1024


def _round_up(x, m):
    return ((x + m - 1) // m) * m


def _vmem_capacity_bytes():
    """Per-core VMEM capacity; conservative 64 MiB (v7x per-TC) fallback."""
    try:
        cap = int(pltpu.get_tpu_info().vmem_capacity_bytes)
        if cap > 0:
            return cap
    except Exception:
        pass
    return 64 * _MIB


def _lowrank_kernel(x_ref, w1_ref, w2_ref, b_ref, o_ref, h_acc):
    # x_ref:  (tm, tk)             row tile x in_features chunk
    # w1_ref: (rank, tk)           low1.weight chunk (native PyTorch layout)
    # w2_ref: (out_features, rank) low2.weight (native PyTorch layout)
    # b_ref:  (1, out_features)
    # o_ref:  (tm, out_features)
    # h_acc:  (tm, rank) f32       accumulator for h = x @ W1^T across K chunks
    k = pl.program_id(1)

    @pl.when(k == 0)
    def _():
        h_acc[...] = jnp.zeros_like(h_acc)

    # h += x_chunk @ W1_chunk^T (contract last dims: no transposed weight copy
    # is ever materialized in HBM; the MXU consumes the trans-B form natively).
    h_acc[...] += lax.dot_general(
        x_ref[...], w1_ref[...],
        dimension_numbers=(((1,), (1,)), ((), ())),
        preferred_element_type=jnp.float32)

    @pl.when(k == pl.num_programs(1) - 1)
    def _():
        # y = h @ W2^T + b, accumulated in f32; bias added in f32.
        y = lax.dot_general(
            h_acc[...].astype(w2_ref.dtype), w2_ref[...],
            dimension_numbers=(((1,), (1,)), ((), ())),
            preferred_element_type=jnp.float32)
        o_ref[...] = (y + b_ref[...].astype(jnp.float32)).astype(o_ref.dtype)


def lowrank_linear(x, w1, w2, b, *, tm=None, vmem_budget_bytes=None,
                   out_dtype=None):
    """y = (x @ w1^T) @ w2^T + b   (PyTorch LowRankLinear forward).

    x:  (M, in_features)
    w1: (rank, in_features)   == low1.weight
    w2: (out_features, rank)  == low2.weight
    b:  (out_features,)       == low2.bias
    Pass bf16 x/w1/w2 to halve streamed HBM bytes; accumulation is always f32.
    """
    M, in_features = x.shape
    rank, in_features_w = w1.shape
    out_features, rank_w = w2.shape
    assert in_features_w == in_features and rank_w == rank
    assert b.shape == (out_features,)

    out_dtype = x.dtype if out_dtype is None else out_dtype
    dt_bytes = jnp.dtype(x.dtype).itemsize
    # dtype-aware sublane multiple for the row tile (f32:8, bf16:16, int8:32).
    sub = max(8, 32 // max(dt_bytes, 1))

    vmem_cap = _vmem_capacity_bytes()
    # v7x: 64 MiB/TC and 2 TensorCores; v5e/v6e: 128 MiB and 1 TC.
    two_tensorcores = vmem_cap <= 64 * _MIB
    if vmem_budget_bytes is None:
        vmem_budget_bytes = int(vmem_cap * 0.7)  # ~45 MiB v7x, ~90 MiB v5e/v6e

    def step_bytes(t_m, t_k):
        # Pallas double-buffers every BlockSpec'd operand (inputs AND output),
        # including the constant-index weight / bias blocks.
        io = 2 * (t_m * t_k                 # x tile
                  + rank * t_k              # w1 chunk
                  + out_features * rank     # w2
                  + out_features            # bias
                  + t_m * out_features      # output tile
                  ) * dt_bytes
        return io + t_m * rank * 4          # f32 accumulator scratch

    # ---- choose (tm, tk) -----------------------------------------------------
    tm_hint = 1024 if tm is None else tm
    tm_eff = max(_round_up(min(tm_hint, _round_up(M, sub)), sub), sub)
    tk = in_features

    # 1) shrink the row tile, but not below ~512 rows (or M): prefer K-tiling
    #    over tiny row tiles so per-step overhead / MXU efficiency stay good.
    tm_floor = min(tm_eff, max(_round_up(min(512, M), sub), sub))
    while tm_eff > tm_floor and step_bytes(tm_eff, tk) > vmem_budget_bytes:
        tm_eff = max(_round_up(tm_eff // 2, sub), sub)

    # 2) if still over budget, tile in_features with exact lane-aligned chunks
    #    (divisors of in_features that are multiples of 128), keeping the
    #    reduction free of out-of-bounds garbage.
    if step_bytes(tm_eff, tk) > vmem_budget_bytes:
        divisors = [d for d in range(128, in_features, 128)
                    if in_features % d == 0]
        for cand in sorted(divisors, reverse=True):
            if step_bytes(tm_eff, cand) <= vmem_budget_bytes:
                tk = cand
                break
        else:
            if divisors:
                tk = min(divisors)

    # 3) last resort: shrink the row tile below the floor.
    while tm_eff > sub and step_bytes(tm_eff, tk) > vmem_budget_bytes:
        tm_eff = max(_round_up(tm_eff // 2, sub), sub)

    # Give v7x's second TensorCore work; skip on single-TC v5e/v6e where this
    # would only add grid-step overhead and smaller DMAs.
    if two_tensorcores and pl.cdiv(M, tm_eff) < 2 and tm_eff > sub:
        half = max(_round_up(tm_eff // 2, sub), sub)
        if pl.cdiv(M, half) >= 2:
            tm_eff = half

    grid = (pl.cdiv(M, tm_eff), in_features // tk)

    b2 = b.reshape(1, out_features)

    flops = 2 * M * (in_features * rank + rank * out_features)
    bytes_accessed = ((M * in_features + M * out_features) * dt_bytes
                      + (rank * in_features * grid[0]   # w1 refetched per row tile
                         + out_features * rank + out_features) * dt_bytes)

    vmem_limit = int(min(vmem_cap,
                         max(step_bytes(tm_eff, tk) + 8 * _MIB, 32 * _MIB)))

    return pl.pallas_call(
        _lowrank_kernel,
        out_shape=jax.ShapeDtypeStruct((M, out_features), out_dtype),
        grid_spec=pltpu.PrefetchScalarGridSpec(
            num_scalar_prefetch=0,
            grid=grid,
            in_specs=[
                pl.BlockSpec((tm_eff, tk), lambda i, k: (i, k)),
                pl.BlockSpec((rank, tk), lambda i, k: (0, k)),
                pl.BlockSpec((out_features, rank), lambda i, k: (0, 0)),
                pl.BlockSpec((1, out_features), lambda i, k: (0, 0)),
            ],
            out_specs=pl.BlockSpec((tm_eff, out_features), lambda i, k: (i, 0)),
            scratch_shapes=[pltpu.VMEM((tm_eff, rank), jnp.float32)],
        ),
        compiler_params=pltpu.CompilerParams(
            dimension_semantics=("parallel", "arbitrary"),
            vmem_limit_bytes=vmem_limit,
        ),
        cost_estimate=pl.CostEstimate(
            flops=flops, transcendentals=0, bytes_accessed=bytes_accessed),
    )(x, w1, w2, b2)


if __name__ == "__main__":
    # Small shapes consistent with the module (rank=32 default).
    batch = 8
    in_features = 256
    out_features = 128
    rank = 32

    key = jax.random.PRNGKey(0)
    kx, k1, k2, kb = jax.random.split(key, 4)

    x = jax.random.normal(kx, (batch, in_features), dtype=jnp.float32)
    # Deterministic "Kaiming-uniform-like" init, same shapes as nn.Linear params.
    w1 = jax.random.uniform(
        k1, (rank, in_features), dtype=jnp.float32,
        minval=-(in_features ** -0.5), maxval=in_features ** -0.5)
    w2 = jax.random.uniform(
        k2, (out_features, rank), dtype=jnp.float32,
        minval=-(rank ** -0.5), maxval=rank ** -0.5)
    b = jax.random.uniform(
        kb, (out_features,), dtype=jnp.float32,
        minval=-(rank ** -0.5), maxval=rank ** -0.5)

    # f32 path.
    out = jax.block_until_ready(lowrank_linear(x, w1, w2, b))
    ref = (x @ w1.T) @ w2.T + b
    assert out.shape == (batch, out_features)
    assert jnp.allclose(out, ref, atol=1e-4, rtol=1e-4), "f32 mismatch vs reference"

    # Non-tile-multiple M: partial tail block, no HBM pad / output slice.
    x2 = jax.random.normal(kx, (300, in_features), dtype=jnp.float32)
    out2 = jax.block_until_ready(lowrank_linear(x2, w1, w2, b))
    ref2 = (x2 @ w1.T) @ w2.T + b
    assert out2.shape == (300, out_features)
    assert jnp.allclose(out2, ref2, atol=1e-4, rtol=1e-4), "tail mismatch"

    # bf16-streaming path (halves HBM traffic; f32 accumulation in kernel).
    # In a real model the params/activations would already be bf16.
    xb, w1b, w2b = (a.astype(jnp.bfloat16) for a in (x2, w1, w2))
    out3 = jax.block_until_ready(
        lowrank_linear(xb, w1b, w2b, b, out_dtype=jnp.float32))
    ref3 = ((xb.astype(jnp.float32) @ w1b.astype(jnp.float32).T)
            @ w2b.astype(jnp.float32).T + b)
    assert out3.shape == (300, out_features)
    assert jnp.allclose(out3, ref3, atol=3e-2, rtol=3e-2), "bf16 mismatch"

    print("KERNEL_OK")
</pallas_src>

<mosaic_0001>
module attributes {stable_mosaic.version = 11 : i64} {
  func.func @_lowrank_kernel(%arg0: i32, %arg1: i32, %arg2: memref<8x256xf32, #tpu.memory_space<vmem>>, %arg3: memref<32x256xf32, #tpu.memory_space<vmem>>, %arg4: memref<128x32xf32, #tpu.memory_space<vmem>>, %arg5: memref<1x128xf32, #tpu.memory_space<vmem>>, %arg6: memref<8x128xf32, #tpu.memory_space<vmem>>, %arg7: memref<8x32xf32, #tpu.memory_space<vmem>>) attributes {dimension_semantics = [#tpu.dimension_semantics<parallel>, #tpu.dimension_semantics<arbitrary>], iteration_bounds = array<i64: 1, 1>, scalar_prefetch = 0 : i64, scratch_operands = 1 : i64, tpu.core_type = #tpu.core_type<tc>, window_params = [{transform_indices = @transform_0, window_bounds = array<i64: 8, 256>}, {transform_indices = @transform_1, window_bounds = array<i64: 32, 256>}, {pipeline_mode = #tpu.pipeline_mode<synchronous>, transform_indices = @transform_2, window_bounds = array<i64: 128, 32>}, {pipeline_mode = #tpu.pipeline_mode<synchronous>, transform_indices = @transform_3, window_bounds = array<i64: 1, 128>}, {transform_indices = @transform_4, window_bounds = array<i64: 8, 128>}]} {
    %c0_i32 = arith.constant 0 : i32
    %0 = arith.cmpi eq, %arg1, %c0_i32 : i32
    %1 = arith.extui %0 : i1 to i32
    %c0_i32_0 = arith.constant 0 : i32
    %2 = arith.cmpi ne, %1, %c0_i32_0 : i32
    scf.if %2 {
      %cst_10 = arith.constant 0.000000e+00 : f32
      %12 = vector.broadcast %cst_10 : f32 to vector<8x32xf32>
      %c0_11 = arith.constant 0 : index
      %c0_12 = arith.constant 0 : index
      %13 = vector.load %arg7[%c0_11, %c0_12] : memref<8x32xf32, #tpu.memory_space<vmem>>, vector<8x32xf32>
      tpu.vector_store %arg7[%c0_11, %c0_12], %12 {strides = array<i32>} : memref<8x32xf32, #tpu.memory_space<vmem>>, vector<8x32xf32>,
    } else {
    }
    %c0 = arith.constant 0 : index
    %c0_1 = arith.constant 0 : index
    %3 = vector.load %arg7[%c0, %c0_1] : memref<8x32xf32, #tpu.memory_space<vmem>>, vector<8x32xf32>
    %c0_2 = arith.constant 0 : index
    %c0_3 = arith.constant 0 : index
    %4 = vector.load %arg2[%c0_2, %c0_3] : memref<8x256xf32, #tpu.memory_space<vmem>>, vector<8x256xf32>
    %c0_4 = arith.constant 0 : index
    %c0_5 = arith.constant 0 : index
    %5 = vector.load %arg3[%c0_4, %c0_5] : memref<32x256xf32, #tpu.memory_space<vmem>>, vector<32x256xf32>
    %cst = arith.constant dense<0.000000e+00> : vector<8x32xf32>
    %6 = tpu.matmul %4, %5, %cst {dimension_numbers = #tpu.dot_dimension_numbers<[1], [1], [0], [0], [0, 0, 1, 0], [], []>} : vector<8x256xf32>, vector<32x256xf32>, vector<8x32xf32> -> vector<8x32xf32>
    %7 = arith.addf %3, %6 : vector<8x32xf32>
    %c0_6 = arith.constant 0 : index
    %c0_7 = arith.constant 0 : index
    %8 = vector.load %arg7[%c0_6, %c0_7] : memref<8x32xf32, #tpu.memory_space<vmem>>, vector<8x32xf32>
    tpu.vector_store %arg7[%c0_6, %c0_7], %7 {strides = array<i32>} : memref<8x32xf32, #tpu.memory_space<vmem>>, vector<8x32xf32>,
    %c0_i32_8 = arith.constant 0 : i32
    %9 = arith.cmpi eq, %arg1, %c0_i32_8 : i32
    %10 = arith.extui %9 : i1 to i32
    %c0_i32_9 = arith.constant 0 : i32
    %11 = arith.cmpi ne, %10, %c0_i32_9 : i32
    scf.if %11 {
      %c0_10 = arith.constant 0 : index
      %c0_11 = arith.constant 0 : index
      %12 = vector.load %arg7[%c0_10, %c0_11] : memref<8x32xf32, #tpu.memory_space<vmem>>, vector<8x32xf32>
      %c0_12 = arith.constant 0 : index
      %c0_13 = arith.constant 0 : index
      %13 = vector.load %arg4[%c0_12, %c0_13] : memref<128x32xf32, #tpu.memory_space<vmem>>, vector<128x32xf32>
      %cst_14 = arith.constant dense<0.000000e+00> : vector<8x128xf32>
      %14 = tpu.matmul %12, %13, %cst_14 {dimension_numbers = #tpu.dot_dimension_numbers<[1], [1], [0], [0], [0, 0, 1, 0], [], []>} : vector<8x32xf32>, vector<128x32xf32>, vector<8x128xf32> -> vector<8x128xf32>
      %c0_15 = arith.constant 0 : index
      %c0_16 = arith.constant 0 : index
      %15 = vector.load %arg5[%c0_15, %c0_16] : memref<1x128xf32, #tpu.memory_space<vmem>>, vector<1x128xf32>
      %16 = vector.broadcast %15 : vector<1x128xf32> to vector<8x128xf32>
      %17 = arith.addf %14, %16 : vector<8x128xf32>
      %c0_17 = arith.constant 0 : index
      %c0_18 = arith.constant 0 : index
      %18 = vector.load %arg6[%c0_17, %c0_18] : memref<8x128xf32, #tpu.memory_space<vmem>>, vector<8x128xf32>
      tpu.vector_store %arg6[%c0_17, %c0_18], %17 {strides = array<i32>} : memref<8x128xf32, #tpu.memory_space<vmem>>, vector<8x128xf32>,
    } else {
    }
    return
  }
  func.func @transform_0(%arg0: i32, %arg1: i32) -> (i32, i32) {
    %c0_i32 = arith.constant 0 : i32
    return %arg0, %arg1 : i32, i32
  }
  func.func @transform_1(%arg0: i32, %arg1: i32) -> (i32, i32) {
    %c0_i32 = arith.constant 0 : i32
    %c0_i32_0 = arith.constant 0 : i32
    return %c0_i32, %arg1 : i32, i32
  }
  func.func @transform_2(%arg0: i32, %arg1: i32) -> (i32, i32) {
    %c0_i32 = arith.constant 0 : i32
    %c0_i32_0 = arith.constant 0 : i32
    %c0_i32_1 = arith.constant 0 : i32
    return %c0_i32, %c0_i32_0 : i32, i32
  }
  func.func @transform_3(%arg0: i32, %arg1: i32) -> (i32, i32) {
    %c0_i32 = arith.constant 0 : i32
    %c0_i32_0 = arith.constant 0 : i32
    %c0_i32_1 = arith.constant 0 : i32
    return %c0_i32, %c0_i32_0 : i32, i32
  }
  func.func @transform_4(%arg0: i32, %arg1: i32) -> (i32, i32) {
    %c0_i32 = arith.constant 0 : i32
    %c0_i32_0 = arith.constant 0 : i32
    return %arg0, %c0_i32 : i32, i32
  }
}

</mosaic_0001>

<bundles_post_ra>
// kernel: tpu_custom_call.1
= control target key start
LH: loop header
LB: loop body
LE: loop exit
PB: predicated region body
PF: predicated region fallthrough
CT: control target
= control target key end

     0   :  { %vm22_vm0 = vcmask 261120   ;;  %v409_v7 = vmov 0.0|0.0   ;;  %v410_v8 = vmov 0.0   ;;  %s556_s0 = inlined_call_operand.vmem [shape: f32[8,256], index: 0, kind: input, shape index: {}]   ;;  %s557_s1 = inlined_call_operand.vmem [shape: f32[32,256], index: 1, kind: input, shape index: {}]   ;;  %s558_s2 = inlined_call_operand.vmem [shape: f32[128,32], index: 2, kind: input, shape index: {}]   ;;  %s559_s3 = inlined_call_operand.vmem [shape: f32[1,128], index: 3, kind: input, shape index: {}]   ;;  %s560_s4 = inlined_call_operand.hbm [shape: f32[8,128], index: 4, kind: output, shape index: {}]  }
   0x1   :  { %v28_v0 = vld [vmem:[%s557_s1 + $0x8] sm:$0xff]  ;;  %v30_v1 = vld [vmem:[%s557_s1 + $0x18] sm:$0xff]  ;;  %v27_v2 = vld [vmem:[%s557_s1] sm:$0xff]  ;;  %349 = vmatprep.subr.bf16.mxu1 %v409_v7  ;;  %23 = vst.msk [vmem:[#allocation2] sm:$0xff] %vm22_vm0, %v410_v8 }
   0x2   :  { %v341_v3 = vpack.c.bf16 %v30_v1, %v28_v0  ;;  %v29_v4 = vld [vmem:[%s557_s1 + $0x10] sm:$0xff]  ;;  %v32_v5 = vld [vmem:[%s557_s1 + $0x28] sm:$0xff]  ;;  %v34_v6 = vld [vmem:[%s557_s1 + $0x38] sm:$0xff] }
   0x3   :  { %v343_v9 = vpack.c.bf16 %v29_v4, %v27_v2  ;;  %v345_v10 = vpack.c.bf16 %v34_v6, %v32_v5  ;;  %v26_v11 = vld [vmem:[%s556_s0 + $0x8] sm:$0xff]  ;;  %v112_v12 = vld [vmem:[%s558_s2] sm:$0xff]  ;;  %vm468_vm1 = vmpackc.low %vm22_vm0, %vm22_vm0 }
   0x4   :  { %342 = vmatprep.subr.bf16.mxu0 %v341_v3  ;;  %99 = vmatprep.mubr.f32.mxu0 %v26_v11  ;;  %v113_v13 = vld [vmem:[%s558_s2 + $0x8] sm:$0xff]  ;;  %v31_v16 = vld [vmem:[%s557_s1 + $0x20] sm:$0xff]  ;;  %v33_v17 = vld [vmem:[%s557_s1 + $0x30] sm:$0xff] }
   0x5   :  { %344 = vmatpush1.bf16.xpose.msra.mxu0 %v343_v9  ;;  %v350_v14 = vpack.c.bf16 %v113_v13, %v112_v12  ;;  %v114_v18 = vld [vmem:[%s558_s2 + $0x10] sm:$0xff]  ;;  %v115_v19 = vld [vmem:[%s558_s2 + $0x18] sm:$0xff]  ;;  %v347_v20 = vpack.c.bf16 %v33_v17, %v31_v16 }
   0x6   :  { %346 = vmatprep.subr.bf16.mxu0 %v345_v10 }
   0x7   :  { %352 = vmatpush3.bf16.xpose.msk.msra.mxu1 %vm468_vm1, %v350_v14 }
   0x8   :  { %353 = vmatprep.subr.bf16.mxu1 %v409_v7 }
   0x9   :  { %9 = vsyncpa [#allocation4], 0  ;;  %v354_v21 = vpack.c.bf16 %v115_v19, %v114_v18  ;;  %v116_v22 = vld [vmem:[%s558_s2 + $0x20] sm:$0xff]  ;;  %v117_v23 = vld [vmem:[%s558_s2 + $0x28] sm:$0xff]  ;;  %vm411_vm2 = vmmov 0  }
   0xa   :  { %v25_v24 = vld [vmem:[%s556_s0] sm:$0xff]  ;;  %v358_v25 = vpack.c.bf16 %v117_v23, %v116_v22  ;;  %v118_v26 = vld [vmem:[%s558_s2 + $0x30] sm:$0xff]  ;;  %v119_v27 = vld [vmem:[%s558_s2 + $0x38] sm:$0xff]  ;;  %338 = vmatprep.mubr.msk.f32.mxu1 %vm411_vm2, %v410_v8 }
   0xb   :  { %v362_v28 = vpack.c.bf16 %v119_v27, %v118_v26  ;;  %v120_v29 = vld [vmem:[%s558_s2 + $0x40] sm:$0xff]  ;;  %v121_v30 = vld [vmem:[%s558_s2 + $0x48] sm:$0xff]  ;;  %v122_v32 = vld [vmem:[%s558_s2 + $0x50] sm:$0xff] }
   0xc   :  { %v366_v31 = vpack.c.bf16 %v121_v30, %v120_v29  ;;  %v123_v33 = vld [vmem:[%s558_s2 + $0x58] sm:$0xff]  ;;  %v124_v35 = vld [vmem:[%s558_s2 + $0x60] sm:$0xff]  ;;  %v125_v36 = vld [vmem:[%s558_s2 + $0x68] sm:$0xff] }
   0xd   :  { %348 = vmatpush1.bf16.xpose.msra.mxu0 %v347_v20  ;;  %v370_v34 = vpack.c.bf16 %v123_v33, %v122_v32  ;;  %v374_v37 = vpack.c.bf16 %v125_v36, %v124_v35  ;;  %v126_v38 = vld [vmem:[%s558_s2 + $0x70] sm:$0xff]  ;;  %v127_v39 = vld [vmem:[%s558_s2 + $0x78] sm:$0xff]  ;;  %v24_v41 = vld [vmem:[#allocation2] sm:$0xff]  ;;  %s412_s2 = smov [#allocation3]  }
   0xe   :  { %v378_v40 = vpack.c.bf16 %v127_v39, %v126_v38  ;;  %v271_v46 = vld [vmem:[%s559_s3] ss:$0 sm:$0xff]  ;;  %s263_s1 = sshll.u32 %s412_s2, 4  ;;  %s264_s1 = int_to_ptr.vmem [resolvable:$true] %s263_s1 }
   0xf   :  { %356 = vmatpush3.bf16.xpose.msk.msra.mxu1 %vm468_vm1, %v354_v21  ;;  %s385_s15 = scalar_lea.vmem %s264_s1, 128  ;;  %p390_p1 = scmp.lt.s32.totalorder %s264_s1, %s264_s1 }
  0x10   :  { %357 = vmatprep.subr.bf16.mxu1 %v409_v7  ;;  %p386_p0 = scmp.ne.s32.totalorder %s264_s1, %s385_s15  ;;  %p391_p2 = scmp.lt.s32.totalorder %s385_s15, %s385_s15 }
  0x12   :  { %p392_p3 = por %p391_p2, %p390_p1 }
  0x14   :  { %100 = vmatmul.mubr.f32.vlgmr.msra.gmra.mrb[0].mxu0 %v25_v24  ;;  %p393_p4 = pnand %p392_p3, %p386_p0 }
  0x17   :  { %360 = vmatpush3.bf16.xpose.msk.msra.mxu1 %vm468_vm1, %v358_v25 }
  0x18   :  { %361 = vmatprep.subr.bf16.mxu1 %v409_v7 }
  0x1f   :  { %364 = vmatpush3.bf16.xpose.msk.msra.mxu1 %vm468_vm1, %v362_v28 }
  0x20   :  { %365 = vmatprep.subr.bf16.mxu1 %v409_v7 }
  0x27   :  { %368 = vmatpush3.bf16.xpose.msk.msra.mxu1 %vm468_vm1, %v366_v31 }
  0x28   :  { %369 = vmatprep.subr.bf16.mxu1 %v409_v7 }
  0x2f   :  { %372 = vmatpush3.bf16.xpose.msk.msra.mxu1 %vm468_vm1, %v370_v34 }
  0x30   :  { %373 = vmatprep.subr.bf16.mxu1 %v409_v7 }
  0x37   :  { %376 = vmatpush3.bf16.xpose.msk.msra.mxu1 %vm468_vm1, %v374_v37 }
  0x38   :  { %377 = vmatprep.subr.bf16.mxu1 %v409_v7 }
  0x3f   :  { %380 = vmatpush3.bf16.xpose.msk.msra.mxu1 %vm468_vm1, %v378_v40 }
  0xe7   :  { %v101_v42 = vpop.f32.mrb[0].mxu0 }
  0xe8   :  { %v105_v43 = vadd.f32 %v101_v42, %v24_v41  ;;  %v103_v44 = vpop.f32.mrb[1].mxu0 }
  0xea   :  { %107 = vst.msk [vmem:[#allocation2] sm:$0xff] %vm22_vm0, %v105_v43 }
  0xf1   :  { %v111_v45 = vld [vmem:[#allocation2] sm:$0xff] }
  0xf2   :  { %339 = vmatmul.mubr.msk.f32.vlgmr.msra.gmra.mrb[0].mxu1 %vm22_vm0, %v111_v45 }
 0x1c5   :  { %v252_v47 = vpop.f32.mrb[0].mxu1 }
 0x1c6   :  { %v253_v48 = vadd.f32 %v271_v46, %v252_v47  ;;  %v340_v49 = vpop.f32.mrb[1].mxu1 }
 0x1c8   :  { %256 = vst [vmem:[#allocation3] sm:$0xff] %v253_v48 }
 0x1c9   :  { %396 = shalt.err (!%p393_p4)
}
 0x1ca   :  { %s397_s18 = scalar_lea.hbm %s560_s4, 128 }
 0x1cb   :  { %p398_p5 = scmp.ne.s32.totalorder %s560_s4, %s397_s18  ;;  %p401_p6 = scmp.lt.u32.totalorder %s397_s18, %s560_s4 }
 0x1cd   :  { %p403_p7 = pnand %p401_p6, %p398_p5 }
 0x1cf   :  { %406 = shalt.err (!%p403_p7)
}
 0x1d0   :  { %266 = dma.vmem_to_hbm [thread:$0]  %s264_s1, 128, %s560_s4, [#allocation4]  }
 0x1d1   :  { %407 = dma.done.wait [#allocation4], 128  }
 0x1d2   :  { %408 = vsyncadd [#allocation4], 4294967168 }
 0x1d3   :  { %270 = vsyncpa [#allocation4], 1 }

</bundles_post_ra>
